<compile_context>
chip_gen: v7x
topology: tpu7x:2x2x1
jax: 0.10.0
libtpu: 0.0.40
codegen_flags: <defaults>
</compile_context>

<pallas_src>
import jax
import jax.numpy as jnp
import numpy as np
from jax.experimental import pallas as pl
from jax.experimental.pallas import tpu as pltpu


# ---------------------------------------------------------------------------
# Kernels
# ---------------------------------------------------------------------------

def _rcu_banded_kernel(x_ref, w1_ref, b1_ref, w2_ref, b2_ref, out_ref):
    """Small-C path: banded-matmul convs on lane-dense (row, (W+2)*C) slabs.

    x_ref : (H+4, (W+2)*C) bf16 — one image, 2-row top/bottom halo, W and C
            flattened into one lane-dense axis with the 1-column halo baked in.
            Resident in VMEM across the row-tile axis (constant block index).
    w1_ref: (3, (W+2)*C, (W+2)*C) banded conv1 weights (one band per vertical tap);
            output columns include the W halo (forced to zero) so conv1's result is
            already conv2's zero-padded input.
    w2_ref: (3, (W+2)*C, W*C) banded conv2 weights (interior output columns only).
    b1_ref: (1, (W+2)*C) conv1 bias, zero in the halo columns.  b2_ref: (1, W*C).
    out_ref: (TH, W*C) lane-dense output slab.
    """
    Hp, L_in = x_ref.shape
    TH, L_out = out_ref.shape
    H = Hp - 4
    C = (L_in - L_out) // 2

    j = pl.program_id(1)
    r0 = pl.multiple_of(j * TH, TH)               # first output row of this tile

    # Padded rows [r0, r0+TH+4) (pre-relu); halo rows/columns are zero and relu
    # keeps them zero.
    xwin = x_ref[pl.ds(r0, TH + 4), :]            # (TH+4, (W+2)*C) bf16
    xin = jnp.maximum(xwin, 0)

    # conv1 + bias + relu for the TH+2 "virtual" rows [r0-1, r0+TH] (1-row halo for
    # conv2).  The horizontal taps live inside the banded weight (K = (W+2)*C), so
    # accumulation stays on the MXU and only two f32 adds remain per conv.
    h1 = jnp.dot(xin[0:TH + 2], w1_ref[0], preferred_element_type=jnp.float32)
    for dy in (1, 2):
        h1 = h1 + jnp.dot(xin[dy:dy + TH + 2], w1_ref[dy],
                          preferred_element_type=jnp.float32)
    h1 = jnp.maximum(h1 + b1_ref[...], 0.0)

    # Rows outside the image must be conv2's zero padding, not "conv1 of padding".
    # (Only the first/last tile has such rows; the select is one cheap VALU pass
    # next to the matmuls, so it is not gated.)
    vrow = r0 - 1 + jax.lax.broadcasted_iota(jnp.int32, (TH + 2, 1), 0)
    h1 = jnp.where((vrow >= 0) & (vrow < H), h1, 0.0)
    # Extra rounding vs the f32 reference: conv1's output re-enters the MXU in bf16.
    h1 = h1.astype(xin.dtype)

    # conv2 + bias, then residual add with the original (pre-relu) X of this tile.
    y = jnp.dot(h1[0:TH], w2_ref[0], preferred_element_type=jnp.float32)
    for dy in (1, 2):
        y = y + jnp.dot(h1[dy:dy + TH], w2_ref[dy],
                        preferred_element_type=jnp.float32)
    y = y + b2_ref[...]
    y = y + xwin[2:TH + 2, C:C + L_out].astype(jnp.float32)   # interior lanes of X
    out_ref[...] = y.astype(out_ref.dtype)


def _rcu_roll_kernel(x_ref, w1_ref, b1_ref, w2_ref, b2_ref, out_ref):
    """Large-C path: per-tap full-width matmuls, dx shift via pltpu.roll.

    x_ref : (H+4, Wp, C) bf16, Wp = W+2 rounded up to a multiple of 8 (extra
            columns zero); resident per image.  w*_ref: (3, 3, C, C) bf16.
    b*_ref: (1, 1, C) f32.  out_ref: (TH, W, C).
    """
    Hp, Wp, C = x_ref.shape
    TH, W, _ = out_ref.shape
    H = Hp - 4

    j = pl.program_id(1)
    r0 = pl.multiple_of(j * TH, TH)

    xwin = x_ref[pl.ds(r0, TH + 4), :, :]                     # (TH+4, Wp, C)
    # Pure view: Wp % 8 == 0, so collapsing (rows, Wp) keeps the layout.
    xin = jnp.maximum(xwin, 0).reshape((TH + 4) * Wp, C)

    def conv(v_flat, nrows, w, to_padded_cols):
        # 3x3 conv over the full padded width: the lhs of every tap is a pure
        # slice (no im2col relayout); the horizontal shift dx is applied to the
        # f32 matmul output with an XLU roll.  pltpu.roll matches jnp.roll
        # (result[i] = y[(i - shift) % n]); the wrapped-around values always come
        # from zero halo columns, so the circular shift is exact.
        total = nrows * Wp
        base = 1 if to_padded_cols else 0   # land in padded- / image-column coords
        acc = None
        for dy in range(3):
            lhs = v_flat[dy * Wp:(dy + nrows) * Wp]           # (nrows*Wp, C) view
            for dx in range(3):
                y = jnp.dot(lhs, w[dy, dx], preferred_element_type=jnp.float32)
                sh = (base - dx) % total
                if sh:
                    y = pltpu.roll(y, shift=sh, axis=0)
                acc = y if acc is None else acc + y
        return acc.reshape(nrows, Wp, C)

    # conv1 + bias + relu for virtual rows [r0-1, r0+TH], emitted in padded
    # columns; halo columns and out-of-image rows are forced to zero so this is
    # directly conv2's zero-padded input (no staging scratch).
    h1 = jnp.maximum(conv(xin, TH + 2, w1_ref[...], True) + b1_ref[...], 0.0)
    col = jax.lax.broadcasted_iota(jnp.int32, (1, Wp, 1), 1)
    vrow = r0 - 1 + jax.lax.broadcasted_iota(jnp.int32, (TH + 2, 1, 1), 0)
    h1 = jnp.where((col >= 1) & (col <= W) & (vrow >= 0) & (vrow < H), h1, 0.0)
    h1 = h1.astype(xin.dtype)               # bf16 for the second MXU pass

    # conv2 + bias in image columns, then the residual add with the pre-relu X.
    y = conv(h1.reshape((TH + 2) * Wp, C), TH, w2_ref[...], False)
    y = y[:, 0:W, :] + b2_ref[...]
    y = y + xwin[2:TH + 2, 1:W + 1, :].astype(jnp.float32)
    out_ref[...] = y.astype(out_ref.dtype)


# ---------------------------------------------------------------------------
# Host-side helpers
# ---------------------------------------------------------------------------

def _banded_weights(wt, W, *, pad_out):
    """Block-banded "width x channel" conv matrix (precomputed once per model).

    wt: (3, 3, Cin, Cout) = (kh, kw, cin, cout).  Returns (3, (W+2)*Cin, ncols*Cout)
    with B[dy, wi*Cin+ci, wo*Cout+co] = wt[dy, wi-wo, ci, co] for wi-wo in {0,1,2};
    pad_out=True adds a zero halo column block on each side of the output so the
    result of the matmul is already in zero-padded column coordinates.
    """
    _, _, Ci, Co = wt.shape
    Wp = W + 2
    dx = jnp.arange(Wp)[:, None] - jnp.arange(W)[None, :]          # w_in - w_out
    mask = ((dx >= 0) & (dx <= 2)).astype(wt.dtype)
    blocks = wt[:, jnp.clip(dx, 0, 2)] * mask[None, :, :, None, None]
    B = blocks.transpose(0, 1, 3, 2, 4).reshape(3, Wp * Ci, W * Co)
    if pad_out:
        B = jnp.pad(B, ((0, 0), (0, 0), (Co, Co)))
    return B


def _choose_tile(H, row_out_bytes, row_tmp_bytes, fixed_bytes, tile_h):
    """Pick the row-tile height against the chip's VMEM budget and return
    (TH, vmem_limit_bytes)."""
    try:
        cap = int(pltpu.get_tpu_info().vmem_capacity_bytes)
    except Exception:                       # no query available -> v7x-safe floor
        cap = 64 * 1024 * 1024
    budget = int(cap * 0.8)                 # headroom for Mosaic internal scratch

    def need(th):
        return fixed_bytes + th * (2 * row_out_bytes + row_tmp_bytes)

    def legal(th):
        return 0 < th <= H and H % th == 0 and (th % 8 == 0 or th == H)

    if tile_h is not None and legal(tile_h):
        th = tile_h
    else:
        cands = sorted({h for h in (H, 256, 128, 64, 32, 16, 8) if legal(h)},
                       reverse=True)
        th = cands[-1] if cands else H
        for c in cands:                     # biggest tile that fits the budget
            if need(c) <= budget:
                th = c
                break
    vmem_limit = int(min(budget, max(need(th) + (8 << 20), 32 << 20)))
    return th, vmem_limit


def residual_conv_unit(x_nchw, w1, b1, w2, b2, *, tile_h=None,
                       compute_dtype=jnp.bfloat16, out_dtype=None):
    """ResidualConvUnit forward (use_bn=False).

    x_nchw: (N, C, H, W); w1/w2: PyTorch layout (Cout, Cin, 3, 3); b1/b2: (C,).
    Returns (N, C, H, W) in `out_dtype` (default: x's dtype).
    """
    N, C, H, W = x_nchw.shape
    assert w1.shape == (C, C, 3, 3) and w2.shape == (C, C, 3, 3)
    assert b1.shape == (C,) and b2.shape == (C,)
    if out_dtype is None:
        out_dtype = x_nchw.dtype
    o_isz = np.dtype(out_dtype).itemsize
    c_isz = np.dtype(compute_dtype).itemsize

    # NHWC + bf16 for the MXU taps.
    # TODO(synk): the NCHW<->NHWC transposes / pad / cast are separate XLA HBM
    # passes; keep the surrounding model in NHWC (with pre-banded weights) to drop
    # them entirely.
    x = jnp.transpose(x_nchw, (0, 2, 3, 1)).astype(compute_dtype)
    wt1 = jnp.transpose(w1, (2, 3, 1, 0))           # (kh, kw, cin, cout), f32
    wt2 = jnp.transpose(w2, (2, 3, 1, 0))

    banded = (C < 128) and ((W + 2) * C <= 512)     # banded weight stays small
    if banded:
        Lin, Lout = (W + 2) * C, W * C
        xk = jnp.pad(x, ((0, 0), (2, 2), (1, 1), (0, 0))).reshape(N, H + 4, Lin)
        B1 = _banded_weights(wt1, W, pad_out=True).astype(compute_dtype)
        B2 = _banded_weights(wt2, W, pad_out=False).astype(compute_dtype)
        b1k = jnp.pad(jnp.tile(b1.astype(jnp.float32), W), (C, C)).reshape(1, Lin)
        b2k = jnp.tile(b2.astype(jnp.float32), W).reshape(1, Lout)

        fixed = 2 * (H + 4) * Lin * c_isz + 2 * (B1.size + B2.size) * c_isz
        row_out = Lout * o_isz
        row_tmp = Lin * (2 * c_isz + 8) + 2 * Lout * 4      # xin + h1(f32/bf16) + y
        TH, vmem_limit = _choose_tile(H, row_out, row_tmp, fixed, tile_h)

        kernel = _rcu_banded_kernel
        in_specs = [
            # Full padded image of batch element n; constant block index along the
            # row-tile axis => stays VMEM-resident, re-DMA'd only per n.
            pl.BlockSpec((None, H + 4, Lin), lambda n, j: (n, 0, 0)),
            pl.BlockSpec((3, Lin, Lin), lambda n, j: (0, 0, 0)),
            pl.BlockSpec((1, Lin), lambda n, j: (0, 0)),
            pl.BlockSpec((3, Lin, Lout), lambda n, j: (0, 0, 0)),
            pl.BlockSpec((1, Lout), lambda n, j: (0, 0)),
        ]
        # TODO(synk): when W*C < 128 these stores are still lane-masked; grouping a
        # few rows per store (out last dim >= 128) would make them unmasked.
        out_specs = pl.BlockSpec((None, TH, Lout), lambda n, j: (n, j, 0))
        out_shape = jax.ShapeDtypeStruct((N, H, Lout), out_dtype)
        args = (xk, B1, b1k, B2, b2k)
    else:
        Wp = ((W + 2 + 7) // 8) * 8                 # W axis padded so flattening
        xk = jnp.pad(x, ((0, 0), (2, 2), (1, Wp - W - 1), (0, 0)))   # is a pure view
        wt1c = wt1.astype(compute_dtype)
        wt2c = wt2.astype(compute_dtype)
        b1k = b1.reshape(1, 1, C).astype(jnp.float32)
        b2k = b2.reshape(1, 1, C).astype(jnp.float32)

        # TODO(synk): at production DPT shapes (C=256, H~W~192) the resident padded
        # image no longer fits v7x's 64 MiB VMEM; switch this input to
        # memory_space=pl.ANY and manually double-buffer (TH+4)-row halo windows
        # with pltpu.make_async_copy (or add a W-tile grid axis).
        fixed = 2 * (H + 4) * Wp * C * c_isz + 4 * 9 * C * C * c_isz
        row_out = W * C * o_isz
        row_tmp = Wp * C * (2 * c_isz + 10)
        TH, vmem_limit = _choose_tile(H, row_out, row_tmp, fixed, tile_h)

        kernel = _rcu_roll_kernel
        in_specs = [
            pl.BlockSpec((None, H + 4, Wp, C), lambda n, j: (n, 0, 0, 0)),
            pl.BlockSpec((3, 3, C, C), lambda n, j: (0, 0, 0, 0)),
            pl.BlockSpec((1, 1, C), lambda n, j: (0, 0, 0)),
            pl.BlockSpec((3, 3, C, C), lambda n, j: (0, 0, 0, 0)),
            pl.BlockSpec((1, 1, C), lambda n, j: (0, 0, 0)),
        ]
        out_specs = pl.BlockSpec((None, TH, W, C), lambda n, j: (n, j, 0, 0))
        out_shape = jax.ShapeDtypeStruct((N, H, W, C), out_dtype)
        args = (xk, wt1c, b1k, wt2c, b2k)

    out = pl.pallas_call(
        kernel,
        out_shape=out_shape,
        grid=(N, H // TH),
        in_specs=in_specs,
        out_specs=out_specs,
        compiler_params=pltpu.CompilerParams(
            # Megacore split lands on the batch axis ("parallel"); the row-tile
            # axis stays "arbitrary" so both cores never DMA the same image.
            dimension_semantics=("parallel", "arbitrary"),
            vmem_limit_bytes=vmem_limit,
        ),
    )(*args)

    if banded:
        out = out.reshape(N, H, W, C)
    return jnp.transpose(out, (0, 3, 1, 2))         # back to NCHW


def _reference(x, w1, b1, w2, b2):
    """Pure-JAX reference of the PyTorch forward (use_bn=False)."""
    def conv(z, w, b):
        y = jax.lax.conv_general_dilated(
            z, w, window_strides=(1, 1), padding=((1, 1), (1, 1)),
            dimension_numbers=("NCHW", "OIHW", "NCHW"))
        return y + b.reshape(1, -1, 1, 1)
    out = jax.nn.relu(x)
    out = conv(out, w1, b1)
    out = jax.nn.relu(out)
    out = conv(out, w2, b2)
    return out + x


if __name__ == "__main__":
    # TODO(synk): use_bn=True branch (BatchNorm2d) not implemented; in eval mode it
    # folds to a per-channel scale/shift after each conv (same place the bias sits).
    N, C, H, W = 2, 4, 16, 16          # token_dim = C = 4
    key = jax.random.PRNGKey(0)
    kx, k1, k2, k3, k4 = jax.random.split(key, 5)

    x = jax.random.normal(kx, (N, C, H, W), dtype=jnp.float32)
    fan_in = C * 3 * 3
    bound = 1.0 / jnp.sqrt(fan_in)
    w1 = jax.random.uniform(k1, (C, C, 3, 3), jnp.float32, -bound, bound)
    b1 = jax.random.uniform(k2, (C,), jnp.float32, -bound, bound)
    w2 = jax.random.uniform(k3, (C, C, 3, 3), jnp.float32, -bound, bound)
    b2 = jax.random.uniform(k4, (C,), jnp.float32, -bound, bound)

    # Reference on bf16-rounded activations/weights (the kernel runs the 3x3 taps
    # in bf16 on the MXU with f32 accumulation, and restages conv1's output in bf16).
    rd = lambda a: a.astype(jnp.bfloat16).astype(jnp.float32)
    ref = _reference(rd(x), rd(w1), b1, rd(w2), b2)

    # Multi-tile run (grid (2, 2)) exercises the row-halo / boundary masking.
    out = residual_conv_unit(x, w1, b1, w2, b2, tile_h=8)
    out = jax.block_until_ready(out)
    assert out.shape == (N, C, H, W)
    assert jnp.allclose(out, ref, rtol=2e-2, atol=2e-2), "mismatch vs reference"

    # Single-tile run with the VMEM-budget-driven tile chooser (TH = H).
    out2 = jax.block_until_ready(residual_conv_unit(x, w1, b1, w2, b2))
    assert jnp.allclose(out2, ref, rtol=2e-2, atol=2e-2), "mismatch (auto tile)"

    print("KERNEL_OK")
</pallas_src>

<mosaic_0001>
module attributes {stable_mosaic.version = 11 : i64} {
  func.func @_rcu_banded_kernel(%arg0: i32, %arg1: i32, %arg2: memref<1x20x72xbf16, #tpu.memory_space<vmem>>, %arg3: memref<3x72x72xbf16, #tpu.memory_space<vmem>>, %arg4: memref<1x72xf32, #tpu.memory_space<vmem>>, %arg5: memref<3x72x64xbf16, #tpu.memory_space<vmem>>, %arg6: memref<1x64xf32, #tpu.memory_space<vmem>>, %arg7: memref<1x8x64xf32, #tpu.memory_space<vmem>>) attributes {dimension_semantics = [#tpu.dimension_semantics<parallel>, #tpu.dimension_semantics<arbitrary>], iteration_bounds = array<i64: 2, 2>, scalar_prefetch = 0 : i64, scratch_operands = 0 : i64, tpu.core_type = #tpu.core_type<tc>, window_params = [{transform_indices = @transform_0, window_bounds = array<i64: 1, 20, 72>}, {pipeline_mode = #tpu.pipeline_mode<synchronous>, transform_indices = @transform_1, window_bounds = array<i64: 3, 72, 72>}, {pipeline_mode = #tpu.pipeline_mode<synchronous>, transform_indices = @transform_2, window_bounds = array<i64: 1, 72>}, {pipeline_mode = #tpu.pipeline_mode<synchronous>, transform_indices = @transform_3, window_bounds = array<i64: 3, 72, 64>}, {pipeline_mode = #tpu.pipeline_mode<synchronous>, transform_indices = @transform_4, window_bounds = array<i64: 1, 64>}, {transform_indices = @transform_5, window_bounds = array<i64: 1, 8, 64>}]} {
    %c8_i32 = arith.constant 8 : i32
    %0 = arith.muli %arg1, %c8_i32 : i32
    %1 = tpu.assume_multiple %0, 8 : i32
    %c0 = arith.constant 0 : index
    %2 = arith.index_cast %1 : i32 to index
    %c0_0 = arith.constant 0 : index
    %3 = vector.load %arg2[%c0, %2, %c0_0] : memref<1x20x72xbf16, #tpu.memory_space<vmem>>, vector<1x12x72xbf16>
    %4 = vector.shape_cast %3 : vector<1x12x72xbf16> to vector<12x72xbf16>
    %cst = arith.constant 0.000000e+00 : bf16
    %5 = vector.broadcast %cst : bf16 to vector<12x72xbf16>
    %6 = arith.maximumf %4, %5 : vector<12x72xbf16>
    %7 = vector.extract_strided_slice %6 {offsets = [0, 0], sizes = [10, 72], strides = [1, 1]} : vector<12x72xbf16> to vector<10x72xbf16>
    %c0_1 = arith.constant 0 : index
    %c0_2 = arith.constant 0 : index
    %c0_3 = arith.constant 0 : index
    %8 = vector.load %arg3[%c0_1, %c0_2, %c0_3] : memref<3x72x72xbf16, #tpu.memory_space<vmem>>, vector<1x72x72xbf16>
    %9 = vector.shape_cast %8 : vector<1x72x72xbf16> to vector<72x72xbf16>
    %cst_4 = arith.constant dense<0.000000e+00> : vector<10x72xf32>
    %10 = tpu.matmul %7, %9, %cst_4 {dimension_numbers = #tpu.dot_dimension_numbers<[1], [0], [0], [1], [0, 0, 1, 1], [], []>} : vector<10x72xbf16>, vector<72x72xbf16>, vector<10x72xf32> -> vector<10x72xf32>
    %11 = vector.extract_strided_slice %6 {offsets = [1, 0], sizes = [10, 72], strides = [1, 1]} : vector<12x72xbf16> to vector<10x72xbf16>
    %c1 = arith.constant 1 : index
    %c0_5 = arith.constant 0 : index
    %c0_6 = arith.constant 0 : index
    %12 = vector.load %arg3[%c1, %c0_5, %c0_6] : memref<3x72x72xbf16, #tpu.memory_space<vmem>>, vector<1x72x72xbf16>
    %13 = vector.shape_cast %12 : vector<1x72x72xbf16> to vector<72x72xbf16>
    %cst_7 = arith.constant dense<0.000000e+00> : vector<10x72xf32>
    %14 = tpu.matmul %11, %13, %cst_7 {dimension_numbers = #tpu.dot_dimension_numbers<[1], [0], [0], [1], [0, 0, 1, 1], [], []>} : vector<10x72xbf16>, vector<72x72xbf16>, vector<10x72xf32> -> vector<10x72xf32>
    %15 = arith.addf %10, %14 : vector<10x72xf32>
    %16 = vector.extract_strided_slice %6 {offsets = [2, 0], sizes = [10, 72], strides = [1, 1]} : vector<12x72xbf16> to vector<10x72xbf16>
    %c2 = arith.constant 2 : index
    %c0_8 = arith.constant 0 : index
    %c0_9 = arith.constant 0 : index
    %17 = vector.load %arg3[%c2, %c0_8, %c0_9] : memref<3x72x72xbf16, #tpu.memory_space<vmem>>, vector<1x72x72xbf16>
    %18 = vector.shape_cast %17 : vector<1x72x72xbf16> to vector<72x72xbf16>
    %cst_10 = arith.constant dense<0.000000e+00> : vector<10x72xf32>
    %19 = tpu.matmul %16, %18, %cst_10 {dimension_numbers = #tpu.dot_dimension_numbers<[1], [0], [0], [1], [0, 0, 1, 1], [], []>} : vector<10x72xbf16>, vector<72x72xbf16>, vector<10x72xf32> -> vector<10x72xf32>
    %20 = arith.addf %15, %19 : vector<10x72xf32>
    %c0_11 = arith.constant 0 : index
    %c0_12 = arith.constant 0 : index
    %21 = vector.load %arg4[%c0_11, %c0_12] : memref<1x72xf32, #tpu.memory_space<vmem>>, vector<1x72xf32>
    %22 = vector.broadcast %21 : vector<1x72xf32> to vector<10x72xf32>
    %23 = arith.addf %20, %22 : vector<10x72xf32>
    %cst_13 = arith.constant 0.000000e+00 : f32
    %24 = vector.broadcast %cst_13 : f32 to vector<10x72xf32>
    %25 = arith.maximumf %23, %24 : vector<10x72xf32>
    %c1_i32 = arith.constant 1 : i32
    %26 = arith.subi %1, %c1_i32 : i32
    %27 = tpu.iota {dimensions = array<i32: 0>} : vector<10x1xi32>
    %28 = vector.broadcast %26 : i32 to vector<10x1xi32>
    %29 = arith.addi %28, %27 : vector<10x1xi32>
    %c0_i32 = arith.constant 0 : i32
    %30 = vector.broadcast %c0_i32 : i32 to vector<10x1xi32>
    %31 = arith.cmpi sge, %29, %30 : vector<10x1xi32>
    %c16_i32 = arith.constant 16 : i32
    %32 = vector.broadcast %c16_i32 : i32 to vector<10x1xi32>
    %33 = arith.cmpi slt, %29, %32 : vector<10x1xi32>
    %34 = arith.andi %31, %33 : vector<10x1xi1>
    %cst_14 = arith.constant 0.000000e+00 : f32
    %35 = vector.shape_cast %34 : vector<10x1xi1> to vector<10x1xi1>
    %36 = vector.broadcast %35 : vector<10x1xi1> to vector<10x72xi1>
    %37 = vector.broadcast %cst_14 : f32 to vector<10x72xf32>
    %38 = arith.select %36, %25, %37 : vector<10x72xi1>, vector<10x72xf32>
    %39 = arith.truncf %38 : vector<10x72xf32> to vector<10x72xbf16>
    %40 = vector.extract_strided_slice %39 {offsets = [0, 0], sizes = [8, 72], strides = [1, 1]} : vector<10x72xbf16> to vector<8x72xbf16>
    %c0_15 = arith.constant 0 : index
    %c0_16 = arith.constant 0 : index
    %c0_17 = arith.constant 0 : index
    %41 = vector.load %arg5[%c0_15, %c0_16, %c0_17] : memref<3x72x64xbf16, #tpu.memory_space<vmem>>, vector<1x72x64xbf16>
    %42 = vector.shape_cast %41 : vector<1x72x64xbf16> to vector<72x64xbf16>
    %cst_18 = arith.constant dense<0.000000e+00> : vector<8x64xf32>
    %43 = tpu.matmul %40, %42, %cst_18 {dimension_numbers = #tpu.dot_dimension_numbers<[1], [0], [0], [1], [0, 0, 1, 1], [], []>} : vector<8x72xbf16>, vector<72x64xbf16>, vector<8x64xf32> -> vector<8x64xf32>
    %44 = vector.extract_strided_slice %39 {offsets = [1, 0], sizes = [8, 72], strides = [1, 1]} : vector<10x72xbf16> to vector<8x72xbf16>
    %c1_19 = arith.constant 1 : index
    %c0_20 = arith.constant 0 : index
    %c0_21 = arith.constant 0 : index
    %45 = vector.load %arg5[%c1_19, %c0_20, %c0_21] : memref<3x72x64xbf16, #tpu.memory_space<vmem>>, vector<1x72x64xbf16>
    %46 = vector.shape_cast %45 : vector<1x72x64xbf16> to vector<72x64xbf16>
    %cst_22 = arith.constant dense<0.000000e+00> : vector<8x64xf32>
    %47 = tpu.matmul %44, %46, %cst_22 {dimension_numbers = #tpu.dot_dimension_numbers<[1], [0], [0], [1], [0, 0, 1, 1], [], []>} : vector<8x72xbf16>, vector<72x64xbf16>, vector<8x64xf32> -> vector<8x64xf32>
    %48 = arith.addf %43, %47 : vector<8x64xf32>
    %49 = vector.extract_strided_slice %39 {offsets = [2, 0], sizes = [8, 72], strides = [1, 1]} : vector<10x72xbf16> to vector<8x72xbf16>
    %c2_23 = arith.constant 2 : index
    %c0_24 = arith.constant 0 : index
    %c0_25 = arith.constant 0 : index
    %50 = vector.load %arg5[%c2_23, %c0_24, %c0_25] : memref<3x72x64xbf16, #tpu.memory_space<vmem>>, vector<1x72x64xbf16>
    %51 = vector.shape_cast %50 : vector<1x72x64xbf16> to vector<72x64xbf16>
    %cst_26 = arith.constant dense<0.000000e+00> : vector<8x64xf32>
    %52 = tpu.matmul %49, %51, %cst_26 {dimension_numbers = #tpu.dot_dimension_numbers<[1], [0], [0], [1], [0, 0, 1, 1], [], []>} : vector<8x72xbf16>, vector<72x64xbf16>, vector<8x64xf32> -> vector<8x64xf32>
    %53 = arith.addf %48, %52 : vector<8x64xf32>
    %c0_27 = arith.constant 0 : index
    %c0_28 = arith.constant 0 : index
    %54 = vector.load %arg6[%c0_27, %c0_28] : memref<1x64xf32, #tpu.memory_space<vmem>>, vector<1x64xf32>
    %55 = vector.broadcast %54 : vector<1x64xf32> to vector<8x64xf32>
    %56 = arith.addf %53, %55 : vector<8x64xf32>
    %57 = vector.extract_strided_slice %4 {offsets = [2, 4], sizes = [8, 64], strides = [1, 1]} : vector<12x72xbf16> to vector<8x64xbf16>
    %58 = arith.extf %57 : vector<8x64xbf16> to vector<8x64xf32>
    %59 = arith.addf %56, %58 : vector<8x64xf32>
    %c0_29 = arith.constant 0 : index
    %c0_30 = arith.constant 0 : index
    %c0_31 = arith.constant 0 : index
    %60 = vector.load %arg7[%c0_29, %c0_30, %c0_31] : memref<1x8x64xf32, #tpu.memory_space<vmem>>, vector<1x8x64xf32>
    %61 = vector.shape_cast %60 : vector<1x8x64xf32> to vector<8x64xf32>
    %62 = vector.shape_cast %59 : vector<8x64xf32> to vector<1x8x64xf32>
    tpu.vector_store %arg7[%c0_29, %c0_30, %c0_31], %62 {strides = array<i32>} : memref<1x8x64xf32, #tpu.memory_space<vmem>>, vector<1x8x64xf32>,
    return
  }
  func.func @transform_0(%arg0: i32, %arg1: i32) -> (i32, i32, i32) {
    %c0_i32 = arith.constant 0 : i32
    %c0_i32_0 = arith.constant 0 : i32
    %c0_i32_1 = arith.constant 0 : i32
    return %arg0, %c0_i32, %c0_i32_0 : i32, i32, i32
  }
  func.func @transform_1(%arg0: i32, %arg1: i32) -> (i32, i32, i32) {
    %c0_i32 = arith.constant 0 : i32
    %c0_i32_0 = arith.constant 0 : i32
    %c0_i32_1 = arith.constant 0 : i32
    %c0_i32_2 = arith.constant 0 : i32
    return %c0_i32, %c0_i32_0, %c0_i32_1 : i32, i32, i32
  }
  func.func @transform_2(%arg0: i32, %arg1: i32) -> (i32, i32) {
    %c0_i32 = arith.constant 0 : i32
    %c0_i32_0 = arith.constant 0 : i32
    %c0_i32_1 = arith.constant 0 : i32
    return %c0_i32, %c0_i32_0 : i32, i32
  }
  func.func @transform_3(%arg0: i32, %arg1: i32) -> (i32, i32, i32) {
    %c0_i32 = arith.constant 0 : i32
    %c0_i32_0 = arith.constant 0 : i32
    %c0_i32_1 = arith.constant 0 : i32
    %c0_i32_2 = arith.constant 0 : i32
    return %c0_i32, %c0_i32_0, %c0_i32_1 : i32, i32, i32
  }
  func.func @transform_4(%arg0: i32, %arg1: i32) -> (i32, i32) {
    %c0_i32 = arith.constant 0 : i32
    %c0_i32_0 = arith.constant 0 : i32
    %c0_i32_1 = arith.constant 0 : i32
    return %c0_i32, %c0_i32_0 : i32, i32
  }
  func.func @transform_5(%arg0: i32, %arg1: i32) -> (i32, i32, i32) {
    %c0_i32 = arith.constant 0 : i32
    %c0_i32_0 = arith.constant 0 : i32
    return %arg0, %arg1, %c0_i32 : i32, i32, i32
  }
}

</mosaic_0001>

<bundles_post_ra>
// kernel: tpu_custom_call.1
= control target key start
LH: loop header
LB: loop body
LE: loop exit
PB: predicated region body
PF: predicated region fallthrough
CT: control target
= control target key end

     0   :  { %10 = vsyncpa [#allocation3], 0  ;;  %s1659_s0 = inlined_call_operand.vmem [shape: bf16[2,20,72], index: 0, kind: input, shape index: {}]   ;;  %s1660_s1 = inlined_call_operand.vmem [shape: bf16[3,72,72], index: 1, kind: input, shape index: {}]   ;;  %s1661_s2 = inlined_call_operand.vmem [shape: f32[1,72], index: 2, kind: input, shape index: {}]   ;;  %s1662_s3 = inlined_call_operand.vmem [shape: bf16[3,72,64], index: 3, kind: input, shape index: {}]   ;;  %s1663_s4 = inlined_call_operand.vmem [shape: f32[1,64], index: 4, kind: input, shape index: {}]   ;;  %s1664_s5 = inlined_call_operand.hbm [shape: f32[2,16,64], index: 5, kind: output, shape index: {}]  }
   0x1   :  { %12 = vsyncpa [#allocation3 + $0x1], 0  ;;  %s1361_s18 = smov 0   ;;  %s1363_s19 = smov 0  }
   0x2   :  { %s1365_s20 = smov 0   ;;  %s1367_s21 = smov 0  }
   0x3   :  { %s1369_s22 = smov 0   ;;  %s1371_s23 = smov 0  }
   0x4   :  { %s1373_s24 = smov 0   ;;  %s1375_s25 = smov 0  }
   0x5 LB: > { %s914_s26 = sadd.s32 4294967295, %s1324_s25   ;;  %s915_s27 = sadd.s32 4294967294, %s1324_s25   ;;  %s1324_s25 = sphi %s1375_s25, %s18_s25   ;;  %s1320_s24 = sphi %s1373_s24, %s1678_s24   ;;  %s1316_s23 = sphi %s1371_s23, %s1677_s23   ;;  %s1312_s22 = sphi %s1369_s22, %s1676_s22   ;;  %s1308_s21 = sphi %s1367_s21, %s1675_s21   ;;  %s1304_s20 = sphi %s1365_s20, %s1674_s20   ;;  %s1300_s19 = sphi %s1363_s19, %s1673_s19   ;;  %s1296_s18 = sphi %s1361_s18, %s1672_s18  }
   0x6   : > { %s27_s28 = sadd.s32 1, %s1316_s23  ;;  %s30_s29 = sadd.s32 1, %s1320_s24 }
   0x7   : > { %p28_p0 = scmp.ge.s32.totalorder %s27_s28, 2  ;;  %p159_p1 = scmp.ne.s32.totalorder %s1304_s20, %s1300_s19 }
   0x8   : > { %p160_p2 = scmp.eq.s32.totalorder %s914_s26, 3  ;;  %p165_p5 = scmp.ne.s32.totalorder %s1300_s19, %s1296_s18 }
   0x9   : > { %s1680_s28 = smov (%p28_p0, %s27_s28), 0  ;;  %s1682_s29 = smov (!%p28_p0, %s30_s29), %s1320_s24 }
   0xa   : > { %s145_s30 = ssub.s32 %s1316_s23, %s1680_s28  ;;  %p1412_p3 = por %p160_p2, %p159_p1 }
   0xb   : > { %p32_p4 = scmp.ge.s32.totalorder %s1682_s29, 2  ;;  %p166_p6 = scmp.eq.s32.totalorder %s915_s27, 3 }
   0xc   : > { %p918_p7 = scmp.ge.s32.totalorder %s1324_s25, 1  ;;  %p204_p9 = scmp.lt.s32.totalorder %s1324_s25, 5 }
   0xd   : > { %s1684_s29 = smov (%p32_p4, %s1682_s29), 0  ;;  %p1421_p8 = por %p166_p6, %p165_p5 }
   0xe   : > { %1668 = sst [smem:[#allocation5_spill]] %s1684_s29  ;;  %s144_s8 = ssub.s32 %s1320_s24, %s1684_s29 }
   0xf   : > { %s149_s9 = sadd.s32 1, %s1304_s20  ;;  %s146_s10 = sor.u32 %s145_s30, %s144_s8 }
  0x10   : > { %p205_p10 = pnand %p918_p7, %p204_p9  ;;  %p147_p11 = scmp.eq.s32.totalorder %s146_s10, 0 }
  0x11   : > { %v1200_v0 = vld [vmem:[%s1660_s1 + $0x24] sm:$0xff] (!%p205_p10)   ;;  %v1326_v1 = vmov (!%p205_p10), 0.0   ;;  %v1202_v3 = vld [vmem:[%s1660_s1 + $0x2c] sm:$0xff] (!%p205_p10)   ;;  %p232_p12 = scmp.lt.s32.totalorder (!%p205_p10), %s1312_s22, 1  ;;  %vm1327_vm0 = vmmov (!%p205_p10), 0   ;;  %s1665_s30 = sshll.u32 (!%p205_p10), %s1308_s21, 3  ;;  %v526_v57 = vlaneseq (!%p205_p10) }
  0x12   : > { %s1430_s11 = scalar_select %p147_p11, %s1304_s20, %s149_s9  }
  0x13   : > { %208 = sbr.rel (%p205_p10) target bundleno = 544 (0x220), region = 40  ;;  %1040 = vmatprep.subr.bf16.mxu0 (!%p205_p10), %v1326_v1  ;;  %1054 = vmatprep.subr.bf16.mxu1 (!%p205_p10), %v1326_v1  ;;  %v1201_v2 = vld [vmem:[%s1660_s1] sm:$0xff] (!%p205_p10)   ;;  %v1203_v4 = vld [vmem:[%s1660_s1 + $0x8] sm:$0xff] (!%p205_p10)   ;;  %v1204_v5 = vld [vmem:[%s1660_s1 + $0x34] sm:$0xff] (!%p205_p10)   ;;  %s239_s12 = sshra.s32 (!%p205_p10), %s1665_s30, 3  ;;  %vm309_vm1 = vcmask (!%p205_p10), 1043456  }
  0x14   : > { %1041 = vmatpush3.bf16.msra.mxu0 (!%p205_p10), %v1200_v0  ;;  %1055 = vmatpush3.bf16.msra.mxu1 (!%p205_p10), %v1201_v2  ;;  %v1205_v6 = vld [vmem:[%s1660_s1 + $0x10] sm:$0xff] (!%p205_p10)   ;;  %v1206_v7 = vld [vmem:[%s1660_s1 + $0x3c] sm:$0xff] (!%p205_p10)   ;;  %s922_s29 = sshll.u32 (!%p205_p10), %s239_s12, 2  ;;  %v1208_v9 = vld [vmem:[%s1660_s1 + $0x44] ss:$0 sps:$4 sm:$0xff] (!%p205_p10)   ;;  %v1328_v13 = vmov (!%p205_p10), 0  }
  0x15   : > { %1042 = vmatprep.subr.bf16.mxu0 (!%p205_p10), %v1326_v1  ;;  %1056 = vmatprep.subr.bf16.mxu1 (!%p205_p10), %v1326_v1  ;;  %v1207_v8 = vld [vmem:[%s1660_s1 + $0x18] sm:$0xff] (!%p205_p10)   ;;  %v1209_v10 = vld [vmem:[%s1660_s1 + $0x20] ss:$0 sps:$4 sm:$0xff] (!%p205_p10)   ;;  %v311_v16 = vsel (!%p205_p10), %vm309_vm1, %v1208_v9, 0  ;;  %vm305_vm2 = vcmask (!%p205_p10), 588800   ;;  %v1210_v22 = vld [vmem:[%s1660_s1 + $0x48] sm:$0xff] (!%p205_p10)  }
  0x16   : > { %1050 = vmatprep.mubr.msk.bf16.mxu0 (!%p205_p10), %vm1327_vm0, %v1326_v1  ;;  %1064 = vmatprep.mubr.msk.bf16.mxu1 (!%p205_p10), %vm1327_vm0, %v1326_v1  ;;  %v384_v18 = vsel (!%p205_p10), %vm309_vm1, %v1209_v10, 0  ;;  %v1211_v24 = vld [vmem:[%s1660_s1 + $0x50] sm:$0xff] (!%p205_p10)   ;;  %v1212_v25 = vld [vmem:[%s1660_s1 + $0x58] sm:$0xff] (!%p205_p10)   ;;  %v1213_v26 = vld [vmem:[%s1660_s1 + $0x60] sm:$0xff] (!%p205_p10)   ;;  %vm814_vm3 = vcmask (!%p205_p10), 1045504   ;;  %s1329_s26 = smov (!%p205_p10), 124  }
  0x17   : > { %v1214_v27 = vld [vmem:[%s1660_s1 + $0x68] ss:$0 sps:$4 sm:$0xff] (!%p205_p10)   ;;  %v1215_v30 = vld [vmem:[%s1662_s3] sm:$0xff] (!%p205_p10)   ;;  %v1218_v33 = vld [vmem:[%s1662_s3 + $0x10] sm:$0xff] (!%p205_p10)   ;;  %v527_v58 = vshrl.u32 (!%p205_p10), %v526_v57, 7  ;;  %s1670_s27 = sshll.u32 (!%p205_p10), %s1308_s21, 3 }
  0x18   : > { %1043 = vmatpush3.bf16.msra.mxu0 (!%p205_p10), %v1202_v3  ;;  %1057 = vmatpush3.bf16.msra.mxu1 (!%p205_p10), %v1203_v4  ;;  %v469_v28 = vsel (!%p205_p10), %vm309_vm1, %v1214_v27, 0  ;;  %v1217_v31 = vld [vmem:[%s1662_s3 + $0x24] sm:$0xff] (!%p205_p10)   ;;  %v1219_v34 = vld [vmem:[%s1662_s3 + $0x2c] sm:$0xff] (!%p205_p10)   ;;  %v1220_v35 = vld [vmem:[%s1662_s3 + $0x18] sm:$0xff] (!%p205_p10)   ;;  %s961_s9 = sadd.s32 (!%p205_p10), 4294967295, %s1670_s27  ;;  %s1000_s13 = sshll.u32 (!%p205_p10), %s1312_s22, 1 }
  0x19   : > { %1044 = vmatprep.subr.bf16.mxu0 (!%p205_p10), %v1326_v1  ;;  %1058 = vmatprep.subr.bf16.mxu1 (!%p205_p10), %v1326_v1  ;;  %v1216_v32 = vld [vmem:[%s1662_s3 + $0x8] sm:$0xff] (!%p205_p10)   ;;  %v1221_v36 = vld [vmem:[%s1662_s3 + $0x34] sm:$0xff] (!%p205_p10)   ;;  %v1222_v37 = vld [vmem:[%s1662_s3 + $0x20] ss:$0 sps:$4 sm:$0xff] (!%p205_p10)   ;;  %v529_v59 = vstv (!%p205_p10), %s961_s9  ;;  %v528_v60 = vadd.s32 (!%p205_p10), 8, %v527_v58  ;;  %s229_s9 = sand.u32 (!%p205_p10), 1, %s1300_s19   ;;  %s836_s14 = sadd.s32 (!%p205_p10), %s1308_s21, %s1000_s13 }
  0x1a   : > { %s233_s8 = scalar_select %p232_p12, %s1312_s22, 1  ;;  %v674_v38 = vsel %vm309_vm1, %v1222_v37, 0  ;;  %v1223_v39 = vld [vmem:[%s1662_s3 + $0x3c] sm:$0xff]   ;;  %v1224_v40 = vld [vmem:[%s1662_s3 + $0x44] ss:$0 sps:$4 sm:$0xff]   ;;  %v530_v61 = vadd.s32 %v529_v59, %v527_v58  ;;  %vm822_vm10 = vcmask 523264  }
  0x1b   : > { %v602_v41 = vsel %vm309_vm1, %v1224_v40, 0  ;;  %v531_v62 = vadd.s32 %v529_v59, %v528_v60  ;;  %v960_v0 = vld [vmem:[%s1661_s2] ss:$0 sm:$0xff]  ;;  %s919_s10 = sshll.u32 %s229_s9, 3  ;;  %s1001_s17 = sshll.u32 %s836_s14, 7 }
  0x1c   : > { %s1124_s15 = smul.u32 12, %s233_s8  ;;  %1045 = vmatpush3.bf16.msra.mxu0 %v1204_v5  ;;  %1059 = vmatpush3.bf16.msra.mxu1 %v1205_v6  ;;  %vm532_vm4 = vcmp.ge.s32.totalorder %v530_v61, 0  ;;  %vm534_vm5 = vcmp.lt.s32.totalorder %v530_v61, 16  ;;  %s1606_s21 = scalar_lea.hbm %s1664_s5, %s1001_s17 }
  0x1d   : > { %1046 = vmatprep.subr.bf16.mxu0 %v1326_v1  ;;  %1060 = vmatprep.subr.bf16.mxu1 %v1326_v1  ;;  %vm533_vm6 = vcmp.ge.s32.totalorder %v531_v62, 0  ;;  %vm535_vm7 = vcmp.lt.s32.totalorder %v531_v62, 16  ;;  %vm536_vm8 = vmand %vm532_vm4, %vm534_vm5  ;;  %s1330_s27 = smov [#allocation2]  }
  0x1e   : > { %s236_s30 = scalar_lea.vmem %s1659_s0, %s1124_s15  ;;  %vm537_vm9 = vmand %vm533_vm6, %vm535_vm7  ;;  %s825_s15 = scalar_lea.sflag [#allocation3], %s229_s9 }
  0x1f   : > { %s242_s8 = scalar_lea.vmem %s236_s30, %s922_s29  ;;  %s231_s29 = scalar_lea.vmem [#allocation2], %s919_s10 }
  0x20   : > { %v1481_v11 = vld [vmem:[%s242_s8] sm:$0xf]  ;;  %v1483_v12 = vld [vmem:[%s242_s8 + $0x4] sm:$0x3]  ;;  %1047 = vmatpush3.bf16.msra.mxu0 %v1206_v7  ;;  %1061 = vmatpush3.bf16.msra.mxu1 %v1207_v8  ;;  %s840_s30 = sshll.u32 %s231_s29, 4  ;;  %s1234_s10 = sshll.u32 %s1330_s27, 4  ;;  %s1608_s30 = int_to_ptr.vmem [resolvable:$true] %s840_s30  ;;  %s1235_s10 = int_to_ptr.vmem [resolvable:$false] %s1234_s10 }
  0x21   : > { %v245_v14 = vmax.bf16 %v1328_v13, %v1481_v11  ;;  %v246_v15 = vmax.bf16 %v1328_v13, %v1483_v12  ;;  %1048 = vmatprep.subr.bf16.mxu0 %v1326_v1  ;;  %1062 = vmatprep.subr.bf16.mxu1 %v1326_v1  ;;  %v810_v42 = vunpack.c.l.bf16 %v1481_v11  ;;  %v811_v43 = vunpack.c.l.bf16 %v1483_v12  ;;  %s1236_s13 = scalar_lea.vmem %s1235_s10, 256  ;;  %p1237_p2 = scmp.lt.s32.totalorder %s1608_s30, %s1235_s10 }
  0x23   : > { %v932_v17 = vcombine.low %v245_v14, %v246_v15  ;;  %v815_v44 = vrot.slane %v810_v42, 2  ;;  %v816_v45 = vrot.slane %v811_v43, 2 }
  0x24   : > { %1049 = vmatpush3.bf16.msra.mxu0 %v311_v16  ;;  %1063 = vmatpush3.bf16.msra.mxu1 %v384_v18 }
  0x25   : > { %v272_v19 = vshrl.u32 %v932_v17, 16  ;;  %v274_v20 = vshll.u32 %v932_v17, 16  ;;  %1068 = vmatprep.subr.bf16.mxu0 %v1326_v1  ;;  %1082 = vmatprep.subr.bf16.mxu1 %v1326_v1  ;;  %v437_v29 = vrot.slane %v932_v17, 1  ;;  %v817_v46 = vsel %vm814_vm3, %v815_v44, %v816_v45 }
  0x26   : > { %818 = vrot.lane.b32.xlu0 %v817_v46, %s1329_s26  ;;  %s1230_s26 = scalar_lea.vmem %s1608_s30, 128 }
  0x27   : > { %v276_v21 = vrot.slane %v274_v20, 1  ;;  %1065 = vmatmul.mubr.msk.bf16.vlgmr.msra.gmra.mrb[0].mxu1 %vm305_vm2, %v932_v17  ;;  %v1225_v17 = vld [vmem:[%s1662_s3 + $0x48] sm:$0xff]   ;;  %v1227_v20 = vld [vmem:[%s1662_s3 + $0x58] sm:$0xff]   ;;  %p1231_p13 = scmp.ne.s32.totalorder %s1608_s30, %s1230_s26  ;;  %p1238_p4 = scmp.lt.s32.totalorder %s1236_s13, %s1230_s26 }
  0x28   : > { %1092 = vmatprep.mubr.msk.bf16.mxu1 %vm1327_vm0, %v1326_v1  ;;  %1083 = vmatpush3.bf16.msra.mxu1 %v1217_v31 }
  0x29   : > { %v277_v23 = vor.u32 %v276_v21, %v272_v19  ;;  %1084 = vmatprep.subr.bf16.mxu1 %v1326_v1  ;;  %v1226_v19 = vld [vmem:[%s1662_s3 + $0x50] sm:$0xff]   ;;  %v1228_v21 = vld [vmem:[%s1662_s3 + $0x60] sm:$0xff]   ;;  %p1232_p0 = pnand %p1231_p13, %p1412_p3  ;;  %p1239_p5 = por %p1238_p4, %p1237_p2 }
  0x2b   : > { %1051 = vmatmul.mubr.msk.bf16.vlgmr.msra.gmra.mrb[0].mxu0 %vm305_vm2, %v277_v23  ;;  %p1233_p1 = pneg %p1232_p0 }
  0x2c   : > { %1069 = vmatpush3.bf16.msra.mxu0 %v1210_v22  ;;  %1078 = vmatprep.mubr.msk.bf16.mxu0 %vm1327_vm0, %v1326_v1  ;;  %v1229_v22 = vld [vmem:[%s1662_s3 + $0x68] ss:$0 sps:$4 sm:$0xff]  }
  0x2d   : > { %1070 = vmatprep.subr.bf16.mxu0 %v1326_v1  ;;  %1085 = vmatpush3.bf16.msra.mxu1 %v1219_v34  ;;  %v759_v23 = vsel %vm309_vm1, %v1229_v22, 0  ;;  %v998_v34 = vld [vmem:[%s1663_s4] ss:$0 sm:$0xff]  ;;  %p1240_p6 = pnand %p1239_p5, %p1233_p1 }
  0x2e   : > { %1086 = vmatprep.subr.bf16.mxu1 %v1326_v1 }
  0x30   : > { %1071 = vmatpush3.bf16.msra.mxu0 %v1211_v24 }
  0x31   : > { %1072 = vmatprep.subr.bf16.mxu0 %v1326_v1  ;;  %1087 = vmatpush3.bf16.msra.mxu1 %v1221_v36 }
  0x32   : > { %1088 = vmatprep.subr.bf16.mxu1 %v1326_v1 }
  0x34   : > { %1073 = vmatpush3.bf16.msra.mxu0 %v1212_v25 }
  0x35   : > { %1074 = vmatprep.subr.bf16.mxu0 %v1326_v1  ;;  %1089 = vmatpush3.bf16.msra.mxu1 %v1223_v39 }
  0x36   : > { %1090 = vmatprep.subr.bf16.mxu1 %v1326_v1 }
  0x38   : > { %1075 = vmatpush3.bf16.msra.mxu0 %v1213_v26 }
  0x39   : > { %1076 = vmatprep.subr.bf16.mxu0 %v1326_v1  ;;  %1091 = vmatpush3.bf16.msra.mxu1 %v602_v41 }
  0x3a   : > { %1110 = vmatprep.subr.bf16.mxu1 %v1326_v1 }
  0x3c   : > { %1077 = vmatpush3.bf16.msra.mxu0 %v469_v28 }
  0x3d   : > { %1096 = vmatprep.subr.bf16.mxu0 %v1326_v1 }
  0x3f   : > { %1079 = vmatmul.mubr.msk.bf16.vlgmr.msra.gmra.mrb[4].mxu0 %vm305_vm2, %v437_v29 }
  0x40   : > { %1106 = vmatprep.mubr.msk.bf16.mxu0 %vm1327_vm0, %v1326_v1  ;;  %1097 = vmatpush3.bf16.msra.mxu0 %v1215_v30 }
  0x41   : > { %1098 = vmatprep.subr.bf16.mxu0 %v1326_v1 }
  0x44   : > { %1099 = vmatpush3.bf16.msra.mxu0 %v1216_v32 }
  0x45   : > { %1100 = vmatprep.subr.bf16.mxu0 %v1326_v1 }
  0x48   : > { %1101 = vmatpush3.bf16.msra.mxu0 %v1218_v33 }
  0x49   : > { %1102 = vmatprep.subr.bf16.mxu0 %v1326_v1 }
  0x4c   : > { %1103 = vmatpush3.bf16.msra.mxu0 %v1220_v35 }
  0x4d   : > { %1104 = vmatprep.subr.bf16.mxu0 %v1326_v1 }
  0x50   : > { %1105 = vmatpush3.bf16.msra.mxu0 %v674_v38 }
  0x98   : > { %v819_v38 = vpop.permute.xlu0 %818 }
  0xfa   : > { %v420_v48 = vpop.f32.mrb[0].mxu1 }
  0xfb   : > { %v1066_v51 = vpop.f32.mrb[1].mxu1 }
  0xfc   : > { %v423_v53 = vpop.f32.mrb[2].mxu1 }
  0xfd   : > { %v1067_v56 = vpop.f32.mrb[3].mxu1 }
  0xfe   : > { %v347_v47 = vpop.f32.mrb[0].mxu0 }
  0xff   : > { %v421_v49 = vadd.f32 %v420_v48, %v347_v47  ;;  %v1052_v50 = vpop.f32.mrb[1].mxu0 }
 0x100   : > { %v350_v52 = vpop.f32.mrb[2].mxu0 }
 0x101   : > { %v424_v54 = vadd.f32 %v423_v53, %v350_v52  ;;  %v1053_v55 = vpop.f32.mrb[3].mxu0 }
 0x112   : > { %v505_v63 = vpop.f32.mrb[4].mxu0 }
 0x113   : > { %v512_v2 = vadd.f32 %v505_v63, %v421_v49  ;;  %v1080_v3 = vpop.f32.mrb[5].mxu0 }
 0x114   : > { %v508_v4 = vpop.f32.mrb[6].mxu0 }
 0x115   : > { %v521_v5 = vadd.f32 %v960_v0, %v512_v2  ;;  %v513_v6 = vadd.f32 %v508_v4, %v424_v54  ;;  %v1081_v7 = vpop.f32.mrb[7].mxu0 }
 0x117   : > { %v523_v8 = vmax.f32 %v521_v5, 0.0  ;;  %v522_v9 = vadd.f32 %v960_v0, %v513_v6 }
 0x119   : > { %v524_v10 = vmax.f32 %v522_v9, 0.0  ;;  %v542_v11 = vsel %vm536_vm8, %v523_v8, 0.0 }
 0x11b   : > { %v543_v12 = vsel %vm537_vm9, %v524_v10, 0.0 }
 0x11c   : > { %v544_v13 = vpack.c.bf16 %v543_v12, %v542_v11 }
 0x11e   : > { %v567_v14 = vshll.u32 %v544_v13, 16  ;;  %1107 = vmatmul.mubr.msk.bf16.vlgmr.msra.gmra.mrb[8].mxu0 %vm305_vm2, %v544_v13  ;;  %v565_v15 = vshrl.u32 %v544_v13, 16  ;;  %v727_v24 = vrot.slane %v544_v13, 1 }
 0x120   : > { %v569_v16 = vrot.slane %v567_v14, 1 }
 0x122   : > { %v570_v18 = vor.u32 %v569_v16, %v565_v15 }
 0x124   : > { %1093 = vmatmul.mubr.msk.bf16.vlgmr.msra.gmra.mrb[4].mxu1 %vm305_vm2, %v570_v18 }
 0x125   : > { %1111 = vmatpush3.bf16.msra.mxu1 %v1225_v17  ;;  %1120 = vmatprep.mubr.msk.bf16.mxu1 %vm1327_vm0, %v1326_v1 }
 0x126   : > { %1112 = vmatprep.subr.bf16.mxu1 %v1326_v1 }
 0x129   : > { %1113 = vmatpush3.bf16.msra.mxu1 %v1226_v19 }
 0x12a   : > { %1114 = vmatprep.subr.bf16.mxu1 %v1326_v1 }
 0x12d   : > { %1115 = vmatpush3.bf16.msra.mxu1 %v1227_v20 }
 0x12e   : > { %1116 = vmatprep.subr.bf16.mxu1 %v1326_v1 }
 0x131   : > { %1117 = vmatpush3.bf16.msra.mxu1 %v1228_v21 }
 0x132   : > { %1118 = vmatprep.subr.bf16.mxu1 %v1326_v1 }
 0x135   : > { %1119 = vmatpush3.bf16.msra.mxu1 %v759_v23 }
 0x138   : > { %1121 = vmatmul.mubr.msk.bf16.vlgmr.msra.gmra.mrb[8].mxu1 %vm305_vm2, %v727_v24 }
 0x1f1   : > { %v710_v25 = vpop.f32.mrb[8].mxu0 }
 0x1f2   : > { %v1108_v26 = vpop.f32.mrb[9].mxu0 }
 0x1f3   : > { %v713_v27 = vpop.f32.mrb[10].mxu0 }
 0x1f4   : > { %v1109_v28 = vpop.f32.mrb[11].mxu0 }
 0x1f7   : > { %v638_v29 = vpop.f32.mrb[4].mxu1 }
 0x1f8   : > { %v711_v30 = vadd.f32 %v710_v25, %v638_v29  ;;  %v1094_v31 = vpop.f32.mrb[5].mxu1 }
 0x1f9   : > { %v641_v32 = vpop.f32.mrb[6].mxu1 }
 0x1fa   : > { %v1095_v33 = vpop.f32.mrb[7].mxu1 }
 0x20b   : > { %v795_v1 = vpop.f32.mrb[8].mxu1 }
 0x20c   : > { %v801_v35 = vadd.f32 %v795_v1, %v711_v30  ;;  %v1122_v36 = vpop.f32.mrb[9].mxu1 }
 0x20d   : > { %v798_v37 = vpop.f32.mrb[10].mxu1 }
 0x20e   : > { %v1123_v39 = vpop.f32.mrb[11].mxu1  ;;  %v809_v40 = vadd.f32 %v998_v34, %v801_v35 }
 0x210   : > { %v821_v41 = vadd.f32 %v819_v38, %v809_v40 }
 0x212   : > { %823 = vst.msk [vmem:[%s231_s29] sm:$0xff] %vm822_vm10, %v821_v41 }
 0x213   : > { %1243 = shalt.err (!%p1240_p6)
}
 0x214   : > { %s1244_s9 = scalar_lea.hbm %s1606_s21, 128  ;;  %s1248_s16 = scalar_lea.hbm %s1664_s5, 512 }
 0x215   : > { %p1245_p7 = scmp.ne.s32.totalorder %s1606_s21, %s1244_s9  ;;  %p1249_p11 = scmp.lt.u32.totalorder %s1606_s21, %s1664_s5 }
 0x216   : > { %p1250_p12 = scmp.lt.u32.totalorder %s1248_s16, %s1244_s9  ;;  %p1252_p0 = scmp.lt.u32.totalorder %s1244_s9, %s1606_s21 }
 0x217   : > { %p1246_p9 = pnand %p1245_p7, %p1412_p3 }
 0x218   : > { %p1251_p13 = por %p1250_p12, %p1249_p11 }
 0x219   : > { %p1247_p10 = pneg %p1246_p9 }
 0x21a   : > { %p1253_p1 = por %p1252_p0, %p1251_p13 }
 0x21c   : > { %p1254_p2 = pnand %p1253_p1, %p1247_p10 }
 0x21e   : > { %1257 = shalt.err (!%p1254_p2)
}
 0x21f   : > { %1125 = dma.vmem_to_hbm [thread:$0]  (%p1412_p3), %s1608_s30, 128, %s1606_s21, %s825_s15  }
 0x220 PF: > { %p1131_p4 = scmp.ge.s32.totalorder %s1324_s25, 2  ;;  %s852_s12 = sand.u32 1, %s1296_s18  }
 0x221   : > { %s853_s22 = scalar_lea.sflag [#allocation3], %s852_s12 }
 0x222   : > { %p1128_p5 = pnand %p1131_p4, %p1421_p8 }
 0x224   : > { %1291 = dma.done.wait (!%p1128_p5), %s853_s22, 128  }
 0x225   : > { %1293 = vsyncadd (!%p1128_p5), %s853_s22, 4294967168  ;;  %s18_s25 = sadd.s32 1, %s1324_s25   ;;  %s1671_s6 = sld [smem:[#allocation5_spill]] }
 0x226   : > { %p15_p6 = scmp.ge.s32.totalorder %s18_s25, 6   ;;  %s1672_s18 = smov %s1300_s19 }
 0x227   : > { %s1673_s19 = smov %s1304_s20  ;;  %s1674_s20 = smov %s1430_s11 }
 0x228   : > { %s1675_s21 = smov %s1316_s23  ;;  %s1676_s22 = smov %s1320_s24 }
 0x229   : > { %s1677_s23 = smov %s1680_s28  ;;  %17 = sbr.rel (!%p15_p6) target bundleno = 5 (0x5), region = 80 }
 0x22b   : > { %s1678_s24 = smov %s1671_s6 }
 0x230   :  { %858 = vsyncpa [#allocation3], 1 }
 0x231   :  { %860 = vsyncpa [#allocation3 + $0x1], 1 }

</bundles_post_ra>
